<compile_context>
chip_gen: v5e
topology: v5e:2x2
jax: 0.10.0
libtpu: 0.0.40
codegen_flags: <defaults>
</compile_context>

<pallas_src>
import jax
import jax.numpy as jnp
from jax import lax
from jax.experimental import pallas as pl
from jax.experimental.pallas import tpu as pltpu


def _round_up(x, m):
    return ((x + m - 1) // m) * m


# ---------------------------------------------------------------------------
# Pallas kernels
# ---------------------------------------------------------------------------
def _encoder_kernel(ids_ref, mask_ref, table_ref, w_ref, out_ref):
    """Fused embedding lookup + masked mean pool + dense projection.

    The gather is realised as a one-hot x table matmul so the [TB, L, H] token
    tensor never exists:

        counts[b, v] = sum_l mask[b, l] * [ids[b, l] == v]       (exact small ints)
        pooled[b, :] = (counts[b, :] @ table) / max(sum_l mask[b, l], 1)
        out[b, :]    = bf16(pooled) @ w                          (f32 MXU acc)

    ids_ref   : [TB, L] int32   (streamed per grid step)
    mask_ref  : [TB, L] int32   (streamed per grid step)
    table_ref : [Vp, H] bf16    (resident, constant index_map)
    w_ref     : [H, H]  bf16    (resident, constant index_map)
    out_ref   : [TB, H] bf16    (lane-dense output block)
    """
    ids = ids_ref[...]
    maskf = mask_ref[...].astype(jnp.float32)                       # [TB, L]
    tb, L = ids.shape
    vp = table_ref.shape[0]

    vocab_iota = lax.broadcasted_iota(jnp.int32, (tb, L, vp), 2)
    onehot = (ids[:, :, None] == vocab_iota).astype(jnp.float32)    # [TB, L, Vp]
    counts = jnp.sum(onehot * maskf[:, :, None], axis=1)            # [TB, Vp] (ints)

    pooled_sum = jnp.dot(counts.astype(jnp.bfloat16), table_ref[...],
                         preferred_element_type=jnp.float32)        # [TB, H] f32
    denom = jnp.maximum(jnp.sum(maskf, axis=1, keepdims=True), 1.0)
    pooled = pooled_sum / denom                                      # divide small [TB,H]

    out = jnp.dot(pooled.astype(jnp.bfloat16), w_ref[...],
                  preferred_element_type=jnp.float32)
    out_ref[...] = out.astype(out_ref.dtype)


def _score_kernel(q_ref, p_ref, out_ref):
    """relevance = sigmoid(q @ p^T) on one lane-dense N tile (bf16 in, f32 acc)."""
    s = lax.dot_general(q_ref[...], p_ref[...],
                        dimension_numbers=(((1,), (1,)), ((), ())),
                        preferred_element_type=jnp.float32)          # [Bq, TN]
    out_ref[...] = jax.nn.sigmoid(s)


# ---------------------------------------------------------------------------
# Wrappers around pallas_call
# ---------------------------------------------------------------------------
def _derive_row_tile(rows, L, vp, H, vmem_limit_bytes, max_tile=512):
    """Budget-driven row tile (review: derive from VMEM, don't hard-code per chip).

    Bytes model:
      resident : 2 buffers x (Vp*H + H*H) bf16              (table + projection)
      per row  : 2 x (2*L*4)   ids+mask blocks (double-buffered int32)
                 + 2 x (H*2)   bf16 output block (double-buffered)
                 + L*Vp*4      in-kernel one-hot intermediate (f32)
                 + 2*H*4       f32 temporaries (pooled_sum / pooled)
    """
    rows8 = _round_up(max(rows, 1), 8)
    resident = 2 * (vp * H + H * H) * 2
    headroom = 8 << 20
    budget = max(vmem_limit_bytes - resident - headroom, 1 << 20)
    per_row = 2 * (2 * L * 4) + 2 * (H * 2) + L * vp * 4 + 2 * H * 4
    tb = max(8, (min(max_tile, budget // per_row) // 8) * 8)
    tb = min(tb, rows8)
    # Keep >=2 grid steps when there is enough work so v7x's two TensorCores
    # both get a share (dimension_semantics=("parallel",)); no-op on v5e/v6e.
    if rows8 >= 16 and rows8 // tb < 2:
        tb = _round_up((rows8 + 1) // 2, 8)
    return tb


def pallas_encode(input_ids, attention_mask, embed_table, proj_w, *,
                  row_tile=None, vmem_limit_bytes=32 * 1024 * 1024):
    """Fused gather + masked mean-pool + projection, row-tiled over the grid.

    input_ids / attention_mask : [rows, L] int   (only these tiny arrays get padded)
    embed_table                : [Vp, H]   bf16  (vocab padded to a multiple of 128)
    proj_w                     : [H, H]    bf16
    returns                    : [rows, H] bf16

    vmem_limit_bytes=32 MiB is valid on every generation (v5e scoped default is
    only 16 MiB — this raises it); bump to 64-96 MiB on v5e/v6e for bigger tiles.
    """
    input_ids = input_ids.astype(jnp.int32)
    attention_mask = attention_mask.astype(jnp.int32)
    rows, L = input_ids.shape
    vp, H = embed_table.shape
    tb = row_tile or _derive_row_tile(rows, L, vp, H, vmem_limit_bytes)
    rows_p = _round_up(rows, tb)
    if rows_p != rows:
        pad = rows_p - rows
        input_ids = jnp.pad(input_ids, ((0, pad), (0, 0)))
        attention_mask = jnp.pad(attention_mask, ((0, pad), (0, 0)))

    out = pl.pallas_call(
        _encoder_kernel,
        out_shape=jax.ShapeDtypeStruct((rows_p, H), jnp.bfloat16),
        grid=(rows_p // tb,),
        in_specs=[
            pl.BlockSpec((tb, L), lambda i: (i, 0)),       # streamed ids
            pl.BlockSpec((tb, L), lambda i: (i, 0)),       # streamed mask
            # Resident weights (constant index_map).  On v7x the default double
            # buffer could be trimmed via pipeline_mode=pl.Buffered(1); cost
            # accepted knowingly (tiny at these shapes).
            pl.BlockSpec((vp, H), lambda i: (0, 0)),
            pl.BlockSpec((H, H), lambda i: (0, 0)),
        ],
        out_specs=pl.BlockSpec((tb, H), lambda i: (i, 0)),  # lane-dense output
        compiler_params=pltpu.CompilerParams(
            dimension_semantics=("parallel",),
            vmem_limit_bytes=vmem_limit_bytes),
    )(input_ids, attention_mask, embed_table, proj_w)
    return out[:rows]


def pallas_relevance_scores(q_emb, p_embs, *, n_tile=512,
                            vmem_limit_bytes=32 * 1024 * 1024):
    """sigmoid(q_emb @ p_embs^T), N tiles are multiples of 128 (lane-dense stores).

    Inputs are cast to bf16 (f32 MXU accumulation).  For moderate N the whole
    score collapses to a single grid step (per-tile MXU work is trivial).
    """
    q_emb = q_emb.astype(jnp.bfloat16)
    p_embs = p_embs.astype(jnp.bfloat16)
    Bq, H = q_emb.shape
    N = p_embs.shape[0]
    tn = min(_round_up(max(n_tile, 128), 128), _round_up(N, 128))
    n_p = _round_up(N, tn)
    if n_p != N:
        p_embs = jnp.pad(p_embs, ((0, n_p - N), (0, 0)))   # pads only tiny [N, H]

    out = pl.pallas_call(
        _score_kernel,
        out_shape=jax.ShapeDtypeStruct((Bq, n_p), jnp.float32),
        grid=(n_p // tn,),
        in_specs=[
            pl.BlockSpec((Bq, H), lambda i: (0, 0)),        # q stays resident
            pl.BlockSpec((tn, H), lambda i: (i, 0)),        # p tiles pipelined
        ],
        out_specs=pl.BlockSpec((Bq, tn), lambda i: (0, i)),
        compiler_params=pltpu.CompilerParams(
            dimension_semantics=("parallel",),
            vmem_limit_bytes=vmem_limit_bytes),
    )(q_emb, p_embs)
    # Padded candidate columns score sigmoid(0)=0.5; slice them off here,
    # adjacent to the call, so no consumer ever ranks phantom candidates.
    return out[:, :N]


# ---------------------------------------------------------------------------
# Retriever (JAX/Pallas port)
# ---------------------------------------------------------------------------
class RetrieverPallas:
    """JAX/Pallas port of Retriever.  The external BERT encoders are replaced by
    deterministic synthetic encoders (embedding lookup -> masked mean pool ->
    dense projection), fully fused into one Pallas kernel per call."""

    def __init__(self, vocab_size, hidden, max_question_len, max_paragraph_len,
                 key=jax.random.PRNGKey(0)):
        assert hidden % 128 == 0, "hidden must be lane-aligned (multiple of 128)"
        k1, k2, k3, k4 = jax.random.split(key, 4)
        self.hidden = hidden
        self.vocab_size = vocab_size
        self.max_question_len = max_question_len
        self.max_paragraph_len = max_paragraph_len
        vp = _round_up(vocab_size, 128)   # lane-dense one-hot / MXU-friendly K

        def make_table(k):
            t = 0.02 * jax.random.normal(k, (vocab_size, hidden), jnp.float32)
            return (jnp.zeros((vp, hidden), jnp.float32)
                    .at[:vocab_size].set(t).astype(jnp.bfloat16))

        self.q_embed_table = make_table(k1)
        self.p_embed_table = make_table(k2)
        self.q_proj = (0.05 * jax.random.normal(k3, (hidden, hidden), jnp.float32)
                       ).astype(jnp.bfloat16)
        self.p_proj = (0.05 * jax.random.normal(k4, (hidden, hidden), jnp.float32)
                       ).astype(jnp.bfloat16)

    # --- stand-in encoders (gather fused inside the Pallas kernel) ---
    # TODO(synk): at production vocab sizes keep the table in HBM
    # (memory_space=pl.ANY) and gather rows via scalar-prefetched ids +
    # pltpu.make_async_copy instead of the in-kernel one-hot matmul used here.
    def _encode_question(self, input_ids, attention_mask, token_type_ids):
        del token_type_ids  # unused by the synthetic encoder (signature parity)
        return pallas_encode(input_ids, attention_mask,
                             self.q_embed_table, self.q_proj)

    def _encode_paragraph(self, input_ids, attention_mask, token_type_ids):
        del token_type_ids
        return pallas_encode(input_ids, attention_mask,
                             self.p_embed_table, self.p_proj)

    # --- mirrors Retriever.compute_emebeddings ---
    def compute_embeddings(self, input_ids_question, attention_mask_question,
                           token_type_ids_question,
                           batch_input_ids_paragraphs,
                           batch_attention_mask_paragraphs,
                           batch_token_type_ids_paragraphs):
        batch_size, num_document, max_len_size = batch_input_ids_paragraphs.shape
        h_question = self._encode_question(
            input_ids_question, attention_mask_question, token_type_ids_question)
        ids_r = batch_input_ids_paragraphs.reshape(-1, max_len_size)
        am_r = batch_attention_mask_paragraphs.reshape(-1, max_len_size)
        tt_r = batch_token_type_ids_paragraphs.reshape(-1, max_len_size)
        h_paragraphs_reshape = self._encode_paragraph(ids_r, am_r, tt_r)  # [B*N, H]
        # The reference reshapes to (B, N, 512, -1) because its encoder emits
        # per-token states; the synthetic encoder emits pooled vectors -> (B, N, H).
        h_paragraphs_batch = h_paragraphs_reshape.reshape(
            batch_size, num_document, -1)
        return h_question, h_paragraphs_batch

    compute_emebeddings = compute_embeddings  # keep the reference's (typo'd) name

    # --- mirrors the numeric core of Retriever.predict ---
    def predict_scores(self, q_inputs, p_inputs):
        q_emb, p_embs = self.compute_embeddings(
            q_inputs["input_ids"], q_inputs["attention_mask"],
            q_inputs["token_type_ids"],
            p_inputs["input_ids"], p_inputs["attention_mask"],
            p_inputs["token_type_ids"])
        # relevance_scores = sigmoid(matmul(q_emb, p_embs.squeeze(0).T)).squeeze(0)
        relevance = pallas_relevance_scores(q_emb, jnp.squeeze(p_embs, 0))[0]  # [N]
        # TODO(synk): tokenizer / string handling of predict() has no Pallas equivalent.
        rerank_index = jnp.argsort(-relevance)  # argsort done in plain JAX (glue)
        return relevance, rerank_index


# ---------------------------------------------------------------------------
if __name__ == "__main__":
    VOCAB, HIDDEN = 64, 128
    BATCH, NUM_DOC, Q_LEN, P_LEN = 2, 3, 8, 8

    retr = RetrieverPallas(VOCAB, HIDDEN, Q_LEN, P_LEN, key=jax.random.PRNGKey(0))

    k1, k2, k3, k4 = jax.random.split(jax.random.PRNGKey(0), 4)
    q_ids = jax.random.randint(k1, (BATCH, Q_LEN), 0, VOCAB, dtype=jnp.int32)
    q_mask = jnp.ones((BATCH, Q_LEN), jnp.int32).at[:, Q_LEN // 2:].set(
        jax.random.bernoulli(k2, 0.5, (BATCH, Q_LEN - Q_LEN // 2)).astype(jnp.int32))
    q_tt = jnp.zeros((BATCH, Q_LEN), jnp.int32)

    p_ids = jax.random.randint(k3, (BATCH, NUM_DOC, P_LEN), 0, VOCAB, dtype=jnp.int32)
    p_mask = jnp.ones((BATCH, NUM_DOC, P_LEN), jnp.int32).at[:, :, P_LEN // 2:].set(
        jax.random.bernoulli(k4, 0.5, (BATCH, NUM_DOC, P_LEN - P_LEN // 2)
                             ).astype(jnp.int32))
    p_tt = jnp.zeros((BATCH, NUM_DOC, P_LEN), jnp.int32)

    h_q, h_p = retr.compute_embeddings(q_ids, q_mask, q_tt, p_ids, p_mask, p_tt)
    jax.block_until_ready((h_q, h_p))
    assert h_q.shape == (BATCH, HIDDEN)
    assert h_p.shape == (BATCH, NUM_DOC, HIDDEN)

    # predict-style scoring: single question (batch 1) vs its paragraphs
    q_inputs = {"input_ids": q_ids[:1], "attention_mask": q_mask[:1],
                "token_type_ids": q_tt[:1]}
    p_inputs = {"input_ids": p_ids[:1], "attention_mask": p_mask[:1],
                "token_type_ids": p_tt[:1]}
    scores, rerank_idx = retr.predict_scores(q_inputs, p_inputs)
    jax.block_until_ready((scores, rerank_idx))
    assert scores.shape == (NUM_DOC,)
    assert rerank_idx.shape == (NUM_DOC,)

    # numerical sanity check vs. a pure-JAX reference that mirrors the kernel
    # math (bf16 weights/activations, f32 accumulation).
    def ref_encode(table, proj, ids, mask):
        tok = jnp.take(table, ids, axis=0).astype(jnp.float32)
        m = mask.astype(jnp.float32)
        denom = jnp.maximum(m.sum(1, keepdims=True), 1.0)
        pooled = (tok * m[..., None]).sum(1) / denom
        return jnp.dot(pooled.astype(jnp.bfloat16), proj,
                       preferred_element_type=jnp.float32)

    ref_q_all = ref_encode(retr.q_embed_table, retr.q_proj, q_ids, q_mask)
    assert jnp.allclose(h_q.astype(jnp.float32), ref_q_all,
                        rtol=2e-2, atol=2e-3), "encoder mismatch"

    ref_q = ref_encode(retr.q_embed_table, retr.q_proj, q_ids[:1], q_mask[:1])
    ref_p = ref_encode(retr.p_embed_table, retr.p_proj, p_ids[0], p_mask[0])
    ref_scores = jax.nn.sigmoid(ref_q @ ref_p.T)[0]
    assert jnp.allclose(scores, ref_scores, rtol=1e-2, atol=2e-3), "score mismatch"

    print("KERNEL_OK")
</pallas_src>

<mosaic_0001>
module attributes {stable_mosaic.version = 11 : i64} {
  func.func @_encoder_kernel(%arg0: i32, %arg1: memref<8x8xi32, #tpu.memory_space<vmem>>, %arg2: memref<8x8xi32, #tpu.memory_space<vmem>>, %arg3: memref<128x128xbf16, #tpu.memory_space<vmem>>, %arg4: memref<128x128xbf16, #tpu.memory_space<vmem>>, %arg5: memref<8x128xbf16, #tpu.memory_space<vmem>>) attributes {dimension_semantics = [#tpu.dimension_semantics<parallel>], iteration_bounds = array<i64: 1>, scalar_prefetch = 0 : i64, scratch_operands = 0 : i64, tpu.core_type = #tpu.core_type<tc>, window_params = [{transform_indices = @transform_0, window_bounds = array<i64: 8, 8>}, {transform_indices = @transform_1, window_bounds = array<i64: 8, 8>}, {pipeline_mode = #tpu.pipeline_mode<synchronous>, transform_indices = @transform_2, window_bounds = array<i64: 128, 128>}, {pipeline_mode = #tpu.pipeline_mode<synchronous>, transform_indices = @transform_3, window_bounds = array<i64: 128, 128>}, {transform_indices = @transform_4, window_bounds = array<i64: 8, 128>}]} {
    %c0 = arith.constant 0 : index
    %c0_0 = arith.constant 0 : index
    %0 = vector.load %arg1[%c0, %c0_0] : memref<8x8xi32, #tpu.memory_space<vmem>>, vector<8x8xi32>
    %c0_1 = arith.constant 0 : index
    %c0_2 = arith.constant 0 : index
    %1 = vector.load %arg2[%c0_1, %c0_2] : memref<8x8xi32, #tpu.memory_space<vmem>>, vector<8x8xi32>
    %2 = arith.sitofp %1 : vector<8x8xi32> to vector<8x8xf32>
    %3 = tpu.iota {dimensions = array<i32: 2>} : vector<8x8x128xi32>
    %4 = vector.shape_cast %0 : vector<8x8xi32> to vector<8x8x1xi32>
    %5 = vector.broadcast %4 : vector<8x8x1xi32> to vector<8x8x128xi32>
    %6 = arith.cmpi eq, %5, %3 : vector<8x8x128xi32>
    %7 = arith.extui %6 : vector<8x8x128xi1> to vector<8x8x128xi32>
    %8 = arith.sitofp %7 : vector<8x8x128xi32> to vector<8x8x128xf32>
    %9 = vector.shape_cast %2 : vector<8x8xf32> to vector<8x8x1xf32>
    %10 = vector.broadcast %9 : vector<8x8x1xf32> to vector<8x8x128xf32>
    %11 = arith.mulf %8, %10 : vector<8x8x128xf32>
    %cst = arith.constant dense<0.000000e+00> : vector<8x128xf32>
    %12 = vector.multi_reduction <add>, %11, %cst [1] : vector<8x8x128xf32> to vector<8x128xf32>
    %13 = arith.truncf %12 : vector<8x128xf32> to vector<8x128xbf16>
    %c0_3 = arith.constant 0 : index
    %c0_4 = arith.constant 0 : index
    %14 = vector.load %arg3[%c0_3, %c0_4] : memref<128x128xbf16, #tpu.memory_space<vmem>>, vector<128x128xbf16>
    %cst_5 = arith.constant dense<0.000000e+00> : vector<8x128xf32>
    %15 = tpu.matmul %13, %14, %cst_5 {dimension_numbers = #tpu.dot_dimension_numbers<[1], [0], [0], [1], [0, 0, 1, 1], [], []>} : vector<8x128xbf16>, vector<128x128xbf16>, vector<8x128xf32> -> vector<8x128xf32>
    %cst_6 = arith.constant dense<0.000000e+00> : vector<8xf32>
    %16 = vector.multi_reduction <add>, %2, %cst_6 [1] : vector<8x8xf32> to vector<8xf32>
    %17 = vector.shape_cast %16 : vector<8xf32> to vector<8x1xf32>
    %cst_7 = arith.constant 1.000000e+00 : f32
    %18 = vector.broadcast %cst_7 : f32 to vector<8x1xf32>
    %19 = arith.maximumf %17, %18 : vector<8x1xf32>
    %20 = vector.broadcast %19 : vector<8x1xf32> to vector<8x128xf32>
    %21 = arith.divf %15, %20 : vector<8x128xf32>
    %22 = arith.truncf %21 : vector<8x128xf32> to vector<8x128xbf16>
    %c0_8 = arith.constant 0 : index
    %c0_9 = arith.constant 0 : index
    %23 = vector.load %arg4[%c0_8, %c0_9] : memref<128x128xbf16, #tpu.memory_space<vmem>>, vector<128x128xbf16>
    %cst_10 = arith.constant dense<0.000000e+00> : vector<8x128xf32>
    %24 = tpu.matmul %22, %23, %cst_10 {dimension_numbers = #tpu.dot_dimension_numbers<[1], [0], [0], [1], [0, 0, 1, 1], [], []>} : vector<8x128xbf16>, vector<128x128xbf16>, vector<8x128xf32> -> vector<8x128xf32>
    %25 = arith.truncf %24 : vector<8x128xf32> to vector<8x128xbf16>
    %c0_11 = arith.constant 0 : index
    %c0_12 = arith.constant 0 : index
    %26 = vector.load %arg5[%c0_11, %c0_12] : memref<8x128xbf16, #tpu.memory_space<vmem>>, vector<8x128xbf16>
    tpu.vector_store %arg5[%c0_11, %c0_12], %25 {strides = array<i32>} : memref<8x128xbf16, #tpu.memory_space<vmem>>, vector<8x128xbf16>,
    return
  }
  func.func @transform_0(%arg0: i32) -> (i32, i32) {
    %c0_i32 = arith.constant 0 : i32
    %c0_i32_0 = arith.constant 0 : i32
    return %arg0, %c0_i32 : i32, i32
  }
  func.func @transform_1(%arg0: i32) -> (i32, i32) {
    %c0_i32 = arith.constant 0 : i32
    %c0_i32_0 = arith.constant 0 : i32
    return %arg0, %c0_i32 : i32, i32
  }
  func.func @transform_2(%arg0: i32) -> (i32, i32) {
    %c0_i32 = arith.constant 0 : i32
    %c0_i32_0 = arith.constant 0 : i32
    %c0_i32_1 = arith.constant 0 : i32
    return %c0_i32, %c0_i32_0 : i32, i32
  }
  func.func @transform_3(%arg0: i32) -> (i32, i32) {
    %c0_i32 = arith.constant 0 : i32
    %c0_i32_0 = arith.constant 0 : i32
    %c0_i32_1 = arith.constant 0 : i32
    return %c0_i32, %c0_i32_0 : i32, i32
  }
  func.func @transform_4(%arg0: i32) -> (i32, i32) {
    %c0_i32 = arith.constant 0 : i32
    %c0_i32_0 = arith.constant 0 : i32
    return %arg0, %c0_i32 : i32, i32
  }
}

</mosaic_0001>

<bundles_post_ra>
// kernel: tpu_custom_call.1
= control target key start
LH: loop header
LB: loop body
LE: loop exit
PB: predicated region body
PF: predicated region fallthrough
CT: control target
= control target key end

     0   :  { %9 = vsyncpa [#allocation3], 0  ;;  %s808_s0 = inlined_call_operand.hbm [shape: s32[8,8], index: 0, kind: input, shape index: {}]   ;;  %s809_s1 = inlined_call_operand.hbm [shape: s32[8,8], index: 1, kind: input, shape index: {}]   ;;  %s810_s2 = inlined_call_operand.hbm [shape: bf16[128,128], index: 2, kind: input, shape index: {}]   ;;  %s811_s3 = inlined_call_operand.hbm [shape: bf16[128,128], index: 3, kind: input, shape index: {}]   ;;  %s812_s4 = inlined_call_operand.hbm [shape: bf16[8,128], index: 4, kind: output, shape index: {}]  }
   0x1   :  { %10 = vsyncpa [#allocation6], 0 }
   0x2   :  { %11 = vsyncpa [#allocation9], 0  ;;  %s29_s17 = sshll.u32 %s809_s1, 4  ;;  %s30_s17 = int_to_ptr.hbm [resolvable:$true] %s29_s17 }
   0x3   :  { %12 = vsyncpa [#allocation4], 0  ;;  %s739_s18 = smov [#allocation5]   ;;  %s18_s22 = sshll.u32 %s808_s0, 4  ;;  %s19_s22 = int_to_ptr.hbm [resolvable:$true] %s18_s22 }
   0x4   :  { %s31_s19 = sshll.u32 %s739_s18, 4  ;;  %s740_s23 = smov [#allocation2]   ;;  %s32_s19 = int_to_ptr.vmem [resolvable:$true] %s31_s19 }
   0x5   :  { %34 = dma.hbm_to_vmem [thread:$0]  %s30_s17, 128, %s32_s19, [#allocation6]  }
   0x6   :  { %s20_s24 = sshll.u32 %s740_s23, 4  ;;  %s39_s27 = sshll.u32 %s810_s2, 4  ;;  %s21_s24 = int_to_ptr.vmem [resolvable:$true] %s20_s24  ;;  %s40_s27 = int_to_ptr.hbm [resolvable:$true] %s39_s27 }
   0x7   :  { %23 = dma.hbm_to_vmem [thread:$0]  %s19_s22, 128, %s21_s24, [#allocation3]  }
   0x8   :  { %s741_s1 = smov [#allocation7]   ;;  %s52_s5 = sshll.u32 %s811_s3, 4  ;;  %s53_s5 = int_to_ptr.hbm [resolvable:$true] %s52_s5 }
   0x9   :  { %s41_s28 = sshll.u32 %s741_s1, 4  ;;  %s742_s6 = smov 64   ;;  %s42_s28 = int_to_ptr.vmem [resolvable:$true] %s41_s28 }
   0xa   :  { %s743_s0 = smov 4   ;;  %s744_s7 = smov [#allocation8]  }
   0xb   :  { %47 = dma.hbm_to_vmem [thread:$0]  %s40_s27, 1024, %s42_s28, [#allocation6], %s742_s6, %s742_s6, %s743_s0  }
   0xc   :  { %s54_s8 = sshll.u32 %s744_s7, 4  ;;  %s55_s8 = int_to_ptr.vmem [resolvable:$true] %s54_s8 }
   0xd   :  { %60 = dma.hbm_to_vmem [thread:$0]  %s53_s5, 1024, %s55_s8, [#allocation9], %s742_s6, %s742_s6, %s743_s0  }
   0xe   :  { %731 = dma.done.wait [#allocation3], 128  }
   0xf   :  { %732 = vsyncadd [#allocation3], 4294967168 }
  0x10   :  { %733 = dma.done.wait [#allocation6], 1152  }
  0x11   :  { %734 = vsyncadd [#allocation6], 4294966144 }
  0x12   :  { %735 = dma.done.wait [#allocation9], 1024  }
  0x13   :  { %736 = vsyncadd [#allocation9], 4294966272  ;;  %v80_v0 = vlaneseq  ;;  %v78_v2 = vld [vmem:[#allocation5] sm:$0xff]  ;;  %v77_v3 = vld [vmem:[#allocation2] sm:$0xff]  ;;  %vm391_vm0 = vcmask 64512   ;;  %v745_v34 = vmov 0.0  }
  0x14   :  { %v79_v4 = vcvt.s32.f32 %v78_v2  ;;  %v96_v5 = vperm.slane %v77_v3, 2  ;;  %v82_v6 = vperm.slane %v77_v3, 0  ;;  %v103_v9 = vperm.slane %v77_v3, 3  ;;  %v589_v23 = vld [vmem:[#allocation7 + $0x38] sm:$0xff]  ;;  %v588_v26 = vld [vmem:[#allocation7 + $0x30] sm:$0xff]  ;;  %v587_v29 = vld [vmem:[#allocation7 + $0x28] sm:$0xff] }
  0x15   :  { %v84_v1 = vshrl.u32 %v80_v0, 7  ;;  %v89_v10 = vperm.slane %v77_v3, 1  ;;  %v117_v11 = vperm.slane %v77_v3, 5  ;;  %v110_v13 = vperm.slane %v77_v3, 4  ;;  %378 = vmatpush.bf16.msra.mxu0 %v589_v23  ;;  %v586_v33 = vld [vmem:[#allocation7 + $0x20] sm:$0xff]  ;;  %v585_v38 = vld [vmem:[#allocation7 + $0x18] sm:$0xff] }
  0x16   :  { %v162_v7 = vperm.slane %v79_v4, 0  ;;  %v169_v8 = vperm.slane %v79_v4, 1  ;;  %v176_v12 = vperm.slane %v79_v4, 2  ;;  %v190_v14 = vperm.slane %v79_v4, 4  ;;  %v584_v46 = vld [vmem:[#allocation7 + $0x10] sm:$0xff]  ;;  %v583_v52 = vld [vmem:[#allocation7 + $0x8] sm:$0xff] }
  0x17   :  { %608 = vset.pattern.permute.xlu2 %v84_v1  ;;  %607 = vset.pattern.permute.xlu1 %v84_v1  ;;  %v124_v15 = vperm.slane %v77_v3, 6  ;;  %v183_v16 = vperm.slane %v79_v4, 3  ;;  %v204_v17 = vperm.slane %v79_v4, 6  ;;  %v197_v18 = vperm.slane %v79_v4, 5  ;;  %v582_v56 = vld [vmem:[#allocation7] sm:$0xff]  ;;  %s746_s2 = smov [#allocation10]  }
  0x18   :  { %606 = vset.pattern.permute.xlu0 %v84_v1  ;;  %v131_v19 = vperm.slane %v77_v3, 7  ;;  %v211_v20 = vperm.slane %v79_v4, 7  ;;  %v784_v27 = vand.u32 127, %v80_v0  ;;  %v392_v31 = vsel %vm391_vm0, %v79_v4, 0.0  ;;  %s496_s3 = sshll.u32 %s746_s2, 4  ;;  %s498_s11 = sshll.u32 %s812_s4, 4  ;;  %s497_s3 = int_to_ptr.vmem [resolvable:$true] %s496_s3  ;;  %s499_s11 = int_to_ptr.hbm [resolvable:$true] %s498_s11 }
  0x19   :  { %379 = vmatpush.bf16.msra.mxu0 %v588_v26  ;;  %vm314_vm9 = vcmask 1041409   ;;  %vm316_vm10 = vcmask 1042434   ;;  %vm318_vm11 = vcmask 1043459   ;;  %vm320_vm12 = vcmask 1044484  }
  0x1a   :  { %vm322_vm13 = vcmask 1045509   ;;  %vm324_vm14 = vcmask 1046534   ;;  %vm326_vm15 = vcmask 1047559  }
  0x1d   :  { %380 = vmatpush.bf16.msra.mxu0 %v587_v29 }
  0x1f   :  { %167 = vperm.xlu2 %608, %v162_v7   ;;  %101 = vperm.xlu1 %607, %v96_v5  }
  0x20   :  { %87 = vperm.xlu0 %606, %v82_v6  }
  0x21   :  { %381 = vmatpush.bf16.msra.mxu0 %v586_v33 }
  0x25   :  { %382 = vmatpush.bf16.msra.mxu0 %v585_v38 }
  0x27   :  { %174 = vperm.xlu2 %608, %v169_v8   ;;  %108 = vperm.xlu1 %607, %v103_v9  }
  0x28   :  { %94 = vperm.xlu0 %606, %v89_v10  }
  0x29   :  { %383 = vmatpush.bf16.msra.mxu0 %v584_v46 }
  0x2d   :  { %384 = vmatpush.bf16.msra.mxu0 %v583_v52 }
  0x2f   :  { %122 = vperm.xlu2 %608, %v117_v11   ;;  %181 = vperm.xlu1 %607, %v176_v12  }
  0x30   :  { %115 = vperm.xlu0 %606, %v110_v13  }
  0x31   :  { %385 = vmatpush.bf16.msra.mxu0 %v582_v56 }
  0x37   :  { %195 = vperm.xlu2 %608, %v190_v14   ;;  %129 = vperm.xlu1 %607, %v124_v15  }
  0x38   :  { %188 = vperm.xlu0 %606, %v183_v16  }
  0x3f   :  { %209 = vperm.xlu2 %608, %v204_v17   ;;  %202 = vperm.xlu1 %607, %v197_v18  }
  0x40   :  { %136 = vperm.xlu0 %606, %v131_v19  }
  0x48   :  { %216 = vperm.xlu0 %606, %v211_v20  }
  0x69   :  { %393 = vadd.xlane.f32.xlu1 %v392_v31 }
  0x79   :  { %v168_v21 = vpop.permute.xlu2 %167 }
  0x81   :  { %v175_v22 = vpop.permute.xlu2 %174 }
  0x89   :  { %v786_v28 = vpop.permute.xlu2 %122 }
  0x8a   :  { %vm143_vm7 = vcmp.eq.s32.totalorder %v786_v28, %v784_v27 }
  0x8b   :  { %v515_v11 = vsel %vm143_vm7, 1.0, %v745_v34 }
  0x91   :  { %v102_v24 = vpop.permute.xlu1 %101  ;;  %v196_v39 = vpop.permute.xlu2 %195 }
  0x92   :  { %v88_v25 = vpop.permute.xlu0 %87  ;;  %vm140_vm3 = vcmp.eq.s32.totalorder %v102_v24, %v784_v27 }
  0x93   :  { %vm138_vm1 = vcmp.eq.s32.totalorder %v88_v25, %v784_v27  ;;  %v512_v41 = vsel %vm140_vm3, 1.0, %v745_v34 }
  0x94   :  { %v510_v36 = vsel %vm138_vm1, 1.0, %v745_v34 }
  0x95   :  { %v218_v40 = vmul.f32 %v510_v36, %v168_v21 }
  0x97   :  { %v226_v49 = vrot.slane %v218_v40, 4 }
  0x99   :  { %v109_v30 = vpop.permute.xlu1 %108  ;;  %v227_v54 = vadd.f32 %v226_v49, %v218_v40  ;;  %v210_v60 = vpop.permute.xlu2 %209 }
  0x9a   :  { %v95_v32 = vpop.permute.xlu0 %94  ;;  %vm141_vm5 = vcmp.eq.s32.totalorder %v109_v30, %v784_v27 }
  0x9b   :  { %vm139_vm2 = vcmp.eq.s32.totalorder %v95_v32, %v784_v27  ;;  %v513_v58 = vsel %vm141_vm5, 1.0, %v745_v34  ;;  %v228_v2 = vrot.slane %v227_v54, 2 }
  0x9c   :  { %v511_v35 = vsel %vm139_vm2, 1.0, %v745_v34 }
  0x9d   :  { %v219_v37 = vmul.f32 %v511_v35, %v175_v22  ;;  %v229_v9 = vadd.f32 %v228_v2, %v227_v54 }
  0x9f   :  { %v232_v45 = vrot.slane %v219_v37, 4  ;;  %v230_v21 = vrot.slane %v229_v9, 1 }
  0xa1   :  { %v182_v42 = vpop.permute.xlu1 %181  ;;  %v233_v51 = vadd.f32 %v232_v45, %v219_v37  ;;  %v231_v30 = vadd.f32 %v230_v21, %v229_v9  ;;  %v596_v9 = vld [vmem:[#allocation8 + $0x30] sm:$0xff] }
  0xa2   :  { %v220_v43 = vmul.f32 %v512_v41, %v182_v42  ;;  %v116_v44 = vpop.permute.xlu0 %115 }
  0xa3   :  { %vm142_vm4 = vcmp.eq.s32.totalorder %v116_v44, %v784_v27  ;;  %v234_v61 = vrot.slane %v233_v51, 2  ;;  %v274_v42 = vpack.c.bf16 %v231_v30, %v231_v30 }
  0xa4   :  { %v238_v47 = vrot.slane %v220_v43, 4  ;;  %v514_v48 = vsel %vm142_vm4, 1.0, %v745_v34 }
  0xa5   :  { %v222_v50 = vmul.f32 %v514_v48, %v196_v39  ;;  %v235_v6 = vadd.f32 %v234_v61, %v233_v51 }
  0xa6   :  { %v239_v53 = vadd.f32 %v238_v47, %v220_v43 }
  0xa7   :  { %v250_v57 = vrot.slane %v222_v50, 4  ;;  %v236_v17 = vrot.slane %v235_v6, 1 }
  0xa8   :  { %v240_v0 = vrot.slane %v239_v53, 2 }
  0xa9   :  { %v130_v55 = vpop.permute.xlu1 %129  ;;  %v251_v4 = vadd.f32 %v250_v57, %v222_v50  ;;  %v237_v26 = vadd.f32 %v236_v17, %v235_v6  ;;  %v306_v50 = vunpack.c.l.b16 %v274_v42  ;;  %v590_v17 = vld [vmem:[#allocation8] sm:$0xff] }
  0xaa   :  { %vm144_vm6 = vcmp.eq.s32.totalorder %v130_v55, %v784_v27  ;;  %v189_v59 = vpop.permute.xlu0 %188  ;;  %v241_v8 = vadd.f32 %v240_v0, %v239_v53 }
  0xab   :  { %v516_v62 = vsel %vm144_vm6, 1.0, %v745_v34  ;;  %v221_v63 = vmul.f32 %v513_v58, %v189_v59  ;;  %v252_v13 = vrot.slane %v251_v4, 2  ;;  %v275_v38 = vpack.c.bf16 %v237_v26, %v237_v26 }
  0xac   :  { %v224_v1 = vmul.f32 %v516_v62, %v210_v60  ;;  %v242_v19 = vrot.slane %v241_v8, 1 }
  0xad   :  { %v244_v3 = vrot.slane %v221_v63, 4  ;;  %v253_v23 = vadd.f32 %v252_v13, %v251_v4  ;;  %v307_v47 = vunpack.c.l.b16 %v275_v38  ;;  %v592_v13 = vld [vmem:[#allocation8 + $0x10] sm:$0xff] }
  0xae   :  { %v262_v5 = vrot.slane %v224_v1, 4  ;;  %v243_v28 = vadd.f32 %v242_v19, %v241_v8  ;;  %v597_v8 = vld [vmem:[#allocation8 + $0x38] sm:$0xff] }
  0xaf   :  { %v245_v7 = vadd.f32 %v244_v3, %v221_v63  ;;  %v254_v32 = vrot.slane %v253_v23, 1  ;;  %v315_v55 = vsel %vm314_vm9, %v307_v47, %v306_v50  ;;  %476 = vmatpush.bf16.msra.mxu1 %v597_v8 }
  0xb0   :  { %v263_v14 = vadd.f32 %v262_v5, %v224_v1  ;;  %v276_v40 = vpack.c.bf16 %v243_v28, %v243_v28 }
  0xb1   :  { %v246_v10 = vrot.slane %v245_v7, 2  ;;  %v203_v12 = vpop.permute.xlu1 %202  ;;  %v255_v45 = vadd.f32 %v254_v32, %v253_v23 }
  0xb2   :  { %v223_v15 = vmul.f32 %v515_v11, %v203_v12  ;;  %v137_v16 = vpop.permute.xlu0 %136  ;;  %v264_v24 = vrot.slane %v263_v14, 2  ;;  %v308_v49 = vunpack.c.l.b16 %v276_v40  ;;  %v594_v11 = vld [vmem:[#allocation8 + $0x20] sm:$0xff]  ;;  %v593_v12 = vld [vmem:[#allocation8 + $0x18] sm:$0xff] }
  0xb3   :  { %v247_v18 = vadd.f32 %v246_v10, %v245_v7  ;;  %vm145_vm8 = vcmp.eq.s32.totalorder %v137_v16, %v784_v27  ;;  %v278_v53 = vpack.c.bf16 %v255_v45, %v255_v45  ;;  %477 = vmatpush.bf16.msra.mxu1 %v596_v9  ;;  %v595_v10 = vld [vmem:[#allocation8 + $0x28] sm:$0xff] }
  0xb4   :  { %v256_v20 = vrot.slane %v223_v15, 4  ;;  %v265_v33 = vadd.f32 %v264_v24, %v263_v14  ;;  %v517_v36 = vsel %vm145_vm8, 1.0, %v745_v34  ;;  %v317_v57 = vsel %vm316_vm10, %v308_v49, %v315_v55  ;;  %v591_v14 = vld [vmem:[#allocation8 + $0x8] sm:$0xff] }
  0xb5   :  { %v248_v22 = vrot.slane %v247_v18, 1  ;;  %v310_v61 = vunpack.c.l.b16 %v278_v53 }
  0xb6   :  { %v257_v25 = vadd.f32 %v256_v20, %v223_v15  ;;  %v266_v46 = vrot.slane %v265_v33, 1 }
  0xb7   :  { %v249_v31 = vadd.f32 %v248_v22, %v247_v18  ;;  %478 = vmatpush.bf16.msra.mxu1 %v595_v10 }
  0xb8   :  { %v258_v29 = vrot.slane %v257_v25, 2  ;;  %v267_v54 = vadd.f32 %v266_v46, %v265_v33 }
  0xb9   :  { %v277_v43 = vpack.c.bf16 %v249_v31, %v249_v31 }
  0xba   :  { %v259_v35 = vadd.f32 %v258_v29, %v257_v25  ;;  %v217_v37 = vpop.permute.xlu0 %216  ;;  %v280_v62 = vpack.c.bf16 %v267_v54, %v267_v54 }
  0xbb   :  { %v225_v39 = vmul.f32 %v517_v36, %v217_v37  ;;  %v309_v51 = vunpack.c.l.b16 %v277_v43  ;;  %479 = vmatpush.bf16.msra.mxu1 %v594_v11 }
  0xbc   :  { %v260_v41 = vrot.slane %v259_v35, 1  ;;  %v312_v3 = vunpack.c.l.b16 %v280_v62 }
  0xbd   :  { %v268_v44 = vrot.slane %v225_v39, 4  ;;  %v319_v60 = vsel %vm318_vm11, %v309_v51, %v317_v57 }
  0xbe   :  { %v261_v27 = vadd.f32 %v260_v41, %v259_v35  ;;  %v321_v0 = vsel %vm320_vm12, %v310_v61, %v319_v60 }
  0xbf   :  { %v269_v48 = vadd.f32 %v268_v44, %v225_v39  ;;  %480 = vmatpush.bf16.msra.mxu1 %v593_v12 }
  0xc0   :  { %v279_v52 = vpack.c.bf16 %v261_v27, %v261_v27 }
  0xc1   :  { %v270_v34 = vrot.slane %v269_v48, 2 }
  0xc2   :  { %v311_v58 = vunpack.c.l.b16 %v279_v52 }
  0xc3   :  { %v271_v56 = vadd.f32 %v270_v34, %v269_v48  ;;  %481 = vmatpush.bf16.msra.mxu1 %v592_v13 }
  0xc4   :  { %v323_v2 = vsel %vm322_vm13, %v311_v58, %v321_v0 }
  0xc5   :  { %v272_v59 = vrot.slane %v271_v56, 1  ;;  %v325_v5 = vsel %vm324_vm14, %v312_v3, %v323_v2 }
  0xc7   :  { %v273_v63 = vadd.f32 %v272_v59, %v271_v56  ;;  %482 = vmatpush.bf16.msra.mxu1 %v591_v14 }
  0xc9   :  { %v281_v1 = vpack.c.bf16 %v273_v63, %v273_v63 }
  0xcb   :  { %v313_v4 = vunpack.c.l.b16 %v281_v1  ;;  %483 = vmatpush.bf16.msra.mxu1 %v590_v17 }
  0xcd   :  { %v327_v6 = vsel %vm326_vm15, %v313_v4, %v325_v5 }
  0xce   :  { %v328_v7 = vpack.c.b16 %v327_v6, %v327_v6 }
  0xd0   :  { %386 = vmatmul.bf16.vlgmr.msra.gmra.mxu0 %v328_v7 }
  0xdc   :  { %v394_v15 = vpop.xlane.xlu1 %393 }
  0xdd   :  { %v395_v16 = vmax.f32 %v394_v15, 1.0 }
  0xdf   :  { %609 = vrcp.f32 %v395_v16  ;;  %vm401_vm0 = vweird.f32 %v395_v16  ;;  %v407_v22 = vand.u32 2147483648, %v395_v16  ;;  %v405_v24 = vand.u32 2147483647, %v395_v16 }
  0xe1   :  { %v408_v25 = vor.u32 1.1754944e-38, %v407_v22  ;;  %vm406_vm3 = vcmp.eq.f32.partialorder %v405_v24, 8.507059e+37 }
  0xe5   :  { %v610_v18 = vpop.eup %609 }
  0xe6   :  { %v397_v19 = vmul.f32 %v610_v18, %v395_v16  ;;  %vm402_vm1 = vweird.f32 %v610_v18 }
  0xe7   :  { %vm403_vm2 = vmor %vm401_vm0, %vm402_vm1 }
  0xe8   :  { %v398_v20 = vsub.f32 1.0, %v397_v19 }
  0xea   :  { %v399_v21 = vmul.f32 %v610_v18, %v398_v20 }
  0xec   :  { %v400_v23 = vadd.f32 %v610_v18, %v399_v21 }
  0xee   :  { %v404_v26 = vsel %vm403_vm2, %v610_v18, %v400_v23 }
  0xef   :  { %v409_v29 = vsel %vm406_vm3, %v408_v25, %v404_v26 }
 0x14d   :  { %v387_v28 = vpop.f32.mrf.mxu0 }
 0x14e   :  { %v410_v30 = vmul.f32 %v409_v29, %v387_v28 }
 0x150   :  { %v411_v31 = vpack.c.bf16 %v410_v30, %v410_v30 }
 0x152   :  { %484 = vmatmul.bf16.vlgmr.msra.gmra.mxu1 %v411_v31 }
 0x155   :  { %v389_v32 = vpop.f32.mrf.mxu0 }
 0x1cf   :  { %v485_v33 = vpop.f32.mrf.mxu1 }
 0x1d0   :  { %v489_v35 = vpack.c.bf16 %v485_v33, %v485_v33 }
 0x1d2   :  { %490 = vst [vmem:[#allocation10] sm:$0xf] %v489_v35 }
 0x1d3   :  { %501 = dma.vmem_to_hbm [thread:$0]  %s497_s3, 64, %s499_s11, [#allocation4]  }
 0x1d7   :  { %v487_v36 = vpop.f32.mrf.mxu1 }
 0x1d8   :  { %737 = dma.done.wait [#allocation4], 64  }
 0x1d9   :  { %738 = vsyncadd [#allocation4], 4294967232 }
 0x1da   :  { %506 = vsyncpa [#allocation3], 1 }
 0x1db   :  { %507 = vsyncpa [#allocation6], 1 }
 0x1dc   :  { %508 = vsyncpa [#allocation9], 1 }
 0x1dd   :  { %509 = vsyncpa [#allocation4], 1 }

</bundles_post_ra>
